<compile_context>
chip_gen: v5e
topology: v5e:2x2
jax: 0.10.0
libtpu: 0.0.40
codegen_flags: <defaults>
</compile_context>

<pallas_src>
import functools

import jax
import jax.numpy as jnp
import numpy as np
from jax import lax
from jax.experimental import pallas as pl
from jax.experimental.pallas import tpu as pltpu

_ATEN_EPS = 1e-12  # PyTorch aten/src/ATen/native/Loss.cpp EPSILON


def _round_up(v, m):
    return ((v + m - 1) // m) * m


def _latent_sim_kernel(x1_ref, x2_ref, lbl_ref, out_ref, *, inv_t, hw, needs_mask):
    """Grid step (bi, ti): one (c, tile_n) slab of pixels of one batch element.

    x1_ref, x2_ref : (c, tile_n)  logits slab (source dtype; cast to f32 in-kernel)
    lbl_ref        : (1, tile_n)  label_change values; 0 == unchanged pixel (contributes)
    out_ref        : (1, tile_n)  f32 per-pixel loss for this tile (written once per step)
    """
    x1 = x1_ref[...].astype(jnp.float32) * inv_t
    x2 = x2_ref[...].astype(jnp.float32) * inv_t

    # Cosine similarity is invariant to positive per-pixel scaling, so the softmax
    # denominator is mathematically redundant: keep only the max-subtraction for exp
    # stability and use the unnormalized exponentials directly.
    e1 = jnp.exp(x1 - jnp.max(x1, axis=0, keepdims=True))
    e2 = jnp.exp(x2 - jnp.max(x2, axis=0, keepdims=True))

    dot = jnp.sum(e1 * e2, axis=0, keepdims=True)                  # (1, tile_n)
    # After max-subtraction the per-pixel max element is exactly 1, so n1, n2 >= 1;
    # adding ATen's EPSILON here perturbs the result by < ~1e-12 relative vs the
    # normalized softmax form — far inside the test tolerance.
    n1 = jnp.sum(e1 * e1, axis=0, keepdims=True) + _ATEN_EPS
    n2 = jnp.sum(e2 * e2, axis=0, keepdims=True) + _ATEN_EPS
    cos = dot * lax.rsqrt(n1 * n2)

    tgt = (lbl_ref[...] == 0).astype(jnp.float32)                  # 1 == unchanged pixel
    contrib = tgt * (1.0 - cos)

    if needs_mask:
        # Ragged last tile: garbage in the padded lanes stays within its own lane
        # (all reductions above are channel-wise), so only the contribution needs masking.
        ti = pl.program_id(1)
        tile_n = out_ref.shape[-1]
        col = lax.broadcasted_iota(jnp.int32, (1, tile_n), 1) + ti * tile_n
        contrib = jnp.where(col < hw, contrib, 0.0)

    out_ref[...] = contrib


def latent_similarity(x1, x2, label_change, *, T=1.0, reduction="mean", tile_n=None):
    """Pallas implementation of LatentSimilarity.forward.

    x1, x2       : (b, c, h, w) float logits (NCHW, any float dtype — no upcast in wrapper)
    label_change : (b, h, w) int/bool, nonzero == "changed"
    """
    b, c, h, w = x1.shape
    assert x2.shape == (b, c, h, w)
    hw = h * w
    n = b * hw

    # Free reshapes only — no transpose / pad / astype of the logit tensors.
    x1v = x1.reshape(b, c, hw)
    x2v = x2.reshape(b, c, hw)
    lblv = label_change.reshape(b, 1, hw)
    if lblv.dtype == jnp.bool_:
        lblv = lblv.astype(jnp.int8)  # cheap fallback; int labels pass through untouched

    # --- generation-aware tile-size selection -----------------------------------------
    item = jnp.dtype(x1.dtype).itemsize
    lbl_item = jnp.dtype(lblv.dtype).itemsize
    sublane = {1: 32, 2: 16, 4: 8}.get(item, 8)
    c_pad = _round_up(c, sublane)        # padded sublane extent of the logit input blocks
    c_pad_f32 = _round_up(c, 8)          # padded sublane extent of the f32 temporaries

    try:
        vmem_cap = int(pltpu.get_tpu_info().vmem_capacity_bytes)   # 64 MiB v7x, 128 MiB v5e/v6e
    except Exception:
        vmem_cap = 64 << 20              # assume the smallest (v7x per-core) if query fails

    # VMEM bytes per output lane of one tile:
    #   2 logit inputs, double-buffered          : 2 * 2 * c_pad * item
    #   label block (padded to 8 sublanes), x2   : 2 * 8 * lbl_item
    #   output block (f32, padded to 8 subl), x2 : 2 * 8 * 4
    #   in-kernel f32 temporaries (casts, exps,
    #   elementwise products)                    : ~6 * c_pad_f32 * 4
    bytes_per_lane = (2 * 2 * c_pad * item) + (2 * 8 * lbl_item) + (2 * 8 * 4) \
                     + (6 * c_pad_f32 * 4)
    vmem_budget = min(int(vmem_cap * 0.55), 96 << 20)   # ~35 MiB on v7x, ~70 MiB on v5e/v6e

    if tile_n is None:
        tile_n = 1 << 30                                 # "as large as the budget allows"
    tile_n = min(tile_n, max(128, (vmem_budget // bytes_per_lane) // 128 * 128))
    if hw >= 128:
        tile_n = max(128, min(tile_n, (hw // 128) * 128))   # lane-aligned and <= hw
    else:
        tile_n = hw                                         # tiny full-extent block
    num_tiles = pl.cdiv(hw, tile_n)
    needs_mask = (hw % tile_n) != 0

    vmem_need = bytes_per_lane * tile_n
    vmem_limit = int(min(vmem_need + vmem_need // 2 + (2 << 20), vmem_cap - (8 << 20)))
    vmem_limit = max(8 << 20, vmem_limit)

    kernel = functools.partial(
        _latent_sim_kernel, inv_t=1.0 / float(T), hw=hw, needs_mask=needs_mask
    )

    partial = pl.pallas_call(
        kernel,
        out_shape=jax.ShapeDtypeStruct((b, 1, num_tiles * tile_n), jnp.float32),
        grid_spec=pltpu.PrefetchScalarGridSpec(
            num_scalar_prefetch=0,
            grid=(b, num_tiles),
            in_specs=[
                pl.BlockSpec((pl.Squeezed(), c, tile_n), lambda bi, ti: (bi, 0, ti)),
                pl.BlockSpec((pl.Squeezed(), c, tile_n), lambda bi, ti: (bi, 0, ti)),
                pl.BlockSpec((pl.Squeezed(), 1, tile_n), lambda bi, ti: (bi, 0, ti)),
            ],
            out_specs=pl.BlockSpec((pl.Squeezed(), 1, tile_n), lambda bi, ti: (bi, 0, ti)),
        ),
        compiler_params=pltpu.CompilerParams(
            # Every grid step writes a disjoint output tile, so BOTH axes are parallel;
            # on v7x megacore this keeps both TensorCores busy even when b == 1.
            dimension_semantics=("parallel", "parallel"),
            vmem_limit_bytes=vmem_limit,
        ),
    )(x1v, x2v, lblv)

    loss_sum = jnp.sum(partial)   # tiny (b, 1, num_tiles*tile_n) reduction outside the kernel
    if reduction == "mean":
        return loss_sum / n
    elif reduction == "sum":
        return loss_sum
    else:
        # TODO(synk): reduction='none' (per-row losses) not implemented; module default is 'mean'.
        raise NotImplementedError(reduction)


def _reference(x1, x2, label_change, T=1.0):
    """Pure-JAX reference mirroring PyTorch's CosineEmbeddingLoss path."""
    b, c, h, w = x1.shape
    s1 = jax.nn.softmax(x1 / T, axis=1).transpose(0, 2, 3, 1).reshape(b * h * w, c)
    s2 = jax.nn.softmax(x2 / T, axis=1).transpose(0, 2, 3, 1).reshape(b * h * w, c)
    tgt = (~label_change.astype(bool)).astype(jnp.float32).reshape(-1)
    dot = jnp.sum(s1 * s2, axis=-1)
    n1 = jnp.sum(s1 * s1, axis=-1) + _ATEN_EPS
    n2 = jnp.sum(s2 * s2, axis=-1) + _ATEN_EPS
    cos = dot / jnp.sqrt(n1 * n2)
    return jnp.mean(tgt * (1.0 - cos))


if __name__ == "__main__":
    key = jax.random.PRNGKey(0)
    k1, k2, k3 = jax.random.split(key, 3)

    b, c, h, w = 2, 4, 16, 16
    x1 = jax.random.normal(k1, (b, c, h, w), dtype=jnp.float32)
    x2 = jax.random.normal(k2, (b, c, h, w), dtype=jnp.float32)
    label_change = (jax.random.uniform(k3, (b, h, w)) > 0.5).astype(jnp.int32)

    loss = jax.block_until_ready(latent_similarity(x1, x2, label_change, T=1.0))
    ref = jax.block_until_ready(_reference(x1, x2, label_change, T=1.0))
    np.testing.assert_allclose(np.asarray(loss), np.asarray(ref), rtol=1e-5, atol=1e-5)

    # Ragged spatial extent (h*w not a multiple of 128) exercises the masked-contribution path.
    h2, w2 = 15, 9
    y1 = jax.random.normal(k1, (b, c, h2, w2), dtype=jnp.float32)
    y2 = jax.random.normal(k2, (b, c, h2, w2), dtype=jnp.float32)
    lbl2 = (jax.random.uniform(k3, (b, h2, w2)) > 0.5).astype(jnp.int32)
    loss2 = jax.block_until_ready(latent_similarity(y1, y2, lbl2, T=1.0))
    ref2 = jax.block_until_ready(_reference(y1, y2, lbl2, T=1.0))
    np.testing.assert_allclose(np.asarray(loss2), np.asarray(ref2), rtol=1e-5, atol=1e-5)

    print("KERNEL_OK")
</pallas_src>

<mosaic_0001>
module attributes {stable_mosaic.version = 11 : i64} {
  func.func @_latent_sim_kernel(%arg0: i32, %arg1: i32, %arg2: memref<1x4x256xf32, #tpu.memory_space<vmem>>, %arg3: memref<1x4x256xf32, #tpu.memory_space<vmem>>, %arg4: memref<1x1x256xi32, #tpu.memory_space<vmem>>, %arg5: memref<1x1x256xf32, #tpu.memory_space<vmem>>) attributes {dimension_semantics = [#tpu.dimension_semantics<parallel>, #tpu.dimension_semantics<parallel>], iteration_bounds = array<i64: 2, 1>, scalar_prefetch = 0 : i64, scratch_operands = 0 : i64, tpu.core_type = #tpu.core_type<tc>, window_params = [{transform_indices = @transform_0, window_bounds = array<i64: 1, 4, 256>}, {transform_indices = @transform_1, window_bounds = array<i64: 1, 4, 256>}, {transform_indices = @transform_2, window_bounds = array<i64: 1, 1, 256>}, {transform_indices = @transform_3, window_bounds = array<i64: 1, 1, 256>}]} {
    %c0 = arith.constant 0 : index
    %c0_0 = arith.constant 0 : index
    %c0_1 = arith.constant 0 : index
    %0 = vector.load %arg2[%c0, %c0_0, %c0_1] : memref<1x4x256xf32, #tpu.memory_space<vmem>>, vector<1x4x256xf32>
    %1 = vector.shape_cast %0 : vector<1x4x256xf32> to vector<4x256xf32>
    %cst = arith.constant 1.000000e+00 : f32
    %2 = vector.broadcast %cst : f32 to vector<4x256xf32>
    %3 = arith.mulf %1, %2 : vector<4x256xf32>
    %c0_2 = arith.constant 0 : index
    %c0_3 = arith.constant 0 : index
    %c0_4 = arith.constant 0 : index
    %4 = vector.load %arg3[%c0_2, %c0_3, %c0_4] : memref<1x4x256xf32, #tpu.memory_space<vmem>>, vector<1x4x256xf32>
    %5 = vector.shape_cast %4 : vector<1x4x256xf32> to vector<4x256xf32>
    %cst_5 = arith.constant 1.000000e+00 : f32
    %6 = vector.broadcast %cst_5 : f32 to vector<4x256xf32>
    %7 = arith.mulf %5, %6 : vector<4x256xf32>
    %cst_6 = arith.constant dense<0xFF800000> : vector<256xf32>
    %8 = vector.multi_reduction <maximumf>, %3, %cst_6 [0] : vector<4x256xf32> to vector<256xf32>
    %9 = vector.shape_cast %8 : vector<256xf32> to vector<1x256xf32>
    %10 = vector.broadcast %9 : vector<1x256xf32> to vector<4x256xf32>
    %11 = arith.subf %3, %10 : vector<4x256xf32>
    %12 = math.exp %11 : vector<4x256xf32>
    %cst_7 = arith.constant dense<0xFF800000> : vector<256xf32>
    %13 = vector.multi_reduction <maximumf>, %7, %cst_7 [0] : vector<4x256xf32> to vector<256xf32>
    %14 = vector.shape_cast %13 : vector<256xf32> to vector<1x256xf32>
    %15 = vector.broadcast %14 : vector<1x256xf32> to vector<4x256xf32>
    %16 = arith.subf %7, %15 : vector<4x256xf32>
    %17 = math.exp %16 : vector<4x256xf32>
    %18 = arith.mulf %12, %17 : vector<4x256xf32>
    %cst_8 = arith.constant dense<0.000000e+00> : vector<256xf32>
    %19 = vector.multi_reduction <add>, %18, %cst_8 [0] : vector<4x256xf32> to vector<256xf32>
    %20 = vector.shape_cast %19 : vector<256xf32> to vector<1x256xf32>
    %21 = arith.mulf %12, %12 : vector<4x256xf32>
    %cst_9 = arith.constant dense<0.000000e+00> : vector<256xf32>
    %22 = vector.multi_reduction <add>, %21, %cst_9 [0] : vector<4x256xf32> to vector<256xf32>
    %23 = vector.shape_cast %22 : vector<256xf32> to vector<1x256xf32>
    %cst_10 = arith.constant 9.99999996E-13 : f32
    %24 = vector.broadcast %cst_10 : f32 to vector<1x256xf32>
    %25 = arith.addf %23, %24 : vector<1x256xf32>
    %26 = arith.mulf %17, %17 : vector<4x256xf32>
    %cst_11 = arith.constant dense<0.000000e+00> : vector<256xf32>
    %27 = vector.multi_reduction <add>, %26, %cst_11 [0] : vector<4x256xf32> to vector<256xf32>
    %28 = vector.shape_cast %27 : vector<256xf32> to vector<1x256xf32>
    %cst_12 = arith.constant 9.99999996E-13 : f32
    %29 = vector.broadcast %cst_12 : f32 to vector<1x256xf32>
    %30 = arith.addf %28, %29 : vector<1x256xf32>
    %31 = arith.mulf %25, %30 : vector<1x256xf32>
    %32 = math.rsqrt %31 : vector<1x256xf32>
    %33 = arith.mulf %20, %32 : vector<1x256xf32>
    %c0_13 = arith.constant 0 : index
    %c0_14 = arith.constant 0 : index
    %c0_15 = arith.constant 0 : index
    %34 = vector.load %arg4[%c0_13, %c0_14, %c0_15] : memref<1x1x256xi32, #tpu.memory_space<vmem>>, vector<1x1x256xi32>
    %35 = vector.shape_cast %34 : vector<1x1x256xi32> to vector<1x256xi32>
    %c0_i32 = arith.constant 0 : i32
    %36 = vector.broadcast %c0_i32 : i32 to vector<1x256xi32>
    %37 = arith.cmpi eq, %35, %36 : vector<1x256xi32>
    %38 = arith.extui %37 : vector<1x256xi1> to vector<1x256xi32>
    %39 = arith.sitofp %38 : vector<1x256xi32> to vector<1x256xf32>
    %cst_16 = arith.constant 1.000000e+00 : f32
    %40 = vector.broadcast %cst_16 : f32 to vector<1x256xf32>
    %41 = arith.subf %40, %33 : vector<1x256xf32>
    %42 = arith.mulf %39, %41 : vector<1x256xf32>
    %c0_17 = arith.constant 0 : index
    %c0_18 = arith.constant 0 : index
    %c0_19 = arith.constant 0 : index
    %43 = vector.load %arg5[%c0_17, %c0_18, %c0_19] : memref<1x1x256xf32, #tpu.memory_space<vmem>>, vector<1x1x256xf32>
    %44 = vector.shape_cast %43 : vector<1x1x256xf32> to vector<1x256xf32>
    %45 = vector.shape_cast %42 : vector<1x256xf32> to vector<1x1x256xf32>
    tpu.vector_store %arg5[%c0_17, %c0_18, %c0_19], %45 {strides = array<i32>} : memref<1x1x256xf32, #tpu.memory_space<vmem>>, vector<1x1x256xf32>,
    return
  }
  func.func @transform_0(%arg0: i32, %arg1: i32) -> (i32, i32, i32) {
    %c0_i32 = arith.constant 0 : i32
    %c0_i32_0 = arith.constant 0 : i32
    return %arg0, %c0_i32, %arg1 : i32, i32, i32
  }
  func.func @transform_1(%arg0: i32, %arg1: i32) -> (i32, i32, i32) {
    %c0_i32 = arith.constant 0 : i32
    %c0_i32_0 = arith.constant 0 : i32
    return %arg0, %c0_i32, %arg1 : i32, i32, i32
  }
  func.func @transform_2(%arg0: i32, %arg1: i32) -> (i32, i32, i32) {
    %c0_i32 = arith.constant 0 : i32
    %c0_i32_0 = arith.constant 0 : i32
    return %arg0, %c0_i32, %arg1 : i32, i32, i32
  }
  func.func @transform_3(%arg0: i32, %arg1: i32) -> (i32, i32, i32) {
    %c0_i32 = arith.constant 0 : i32
    %c0_i32_0 = arith.constant 0 : i32
    return %arg0, %c0_i32, %arg1 : i32, i32, i32
  }
}

</mosaic_0001>

<bundles_post_ra>
// kernel: tpu_custom_call.1
= control target key start
LH: loop header
LB: loop body
LE: loop exit
PB: predicated region body
PF: predicated region fallthrough
CT: control target
= control target key end

     0   :  { %s1086_s0 = inlined_call_operand.hbm [shape: f32[2,4,256], index: 0, kind: input, shape index: {}]   ;;  %s1087_s1 = inlined_call_operand.hbm [shape: f32[2,4,256], index: 1, kind: input, shape index: {}]   ;;  %s1088_s2 = inlined_call_operand.hbm [shape: s32[2,1,256], index: 2, kind: input, shape index: {}]   ;;  %s1089_s3 = inlined_call_operand.hbm [shape: f32[2,1,256], index: 3, kind: output, shape index: {}]  }
   0x1   :  { %1095 = sst [smem:[#allocation17_spill]] %s1087_s1 }
   0x2   :  { %8 = vsyncpa [#allocation3], 0 }
   0x3   :  { %10 = vsyncpa [#allocation3 + $0x1], 0 }
   0x4   :  { %11 = vsyncpa [#allocation6], 0 }
   0x5   :  { %13 = vsyncpa [#allocation6 + $0x1], 0 }
   0x6   :  { %14 = vsyncpa [#allocation4], 0 }
   0x7   :  { %16 = vsyncpa [#allocation4 + $0x1], 0  ;;  %s916_s12 = smov 0   ;;  %s918_s13 = smov 0  }
   0x8   :  { %s920_s14 = smov 0   ;;  %s922_s15 = smov 0  }
   0x9   :  { %s924_s16 = smov 0   ;;  %s926_s17 = smov 0  }
   0xa LB: > { %1096 = sst [smem:[#allocation12_spill]] %s881_s14  ;;  %s947_s18 = sadd.s32 4294967295, %s893_s17   ;;  %s893_s17 = sphi %s926_s17, %s22_s17   ;;  %s889_s16 = sphi %s924_s16, %s1117_s16   ;;  %s885_s15 = sphi %s922_s15, %s1116_s15   ;;  %s881_s14 = sphi %s920_s14, %s1115_s14   ;;  %s877_s13 = sphi %s918_s13, %s1114_s13   ;;  %s873_s12 = sphi %s916_s12, %s1113_s12  }
   0xb   : > { %1097 = sst [smem:[#allocation13_spill]] %s893_s17  ;;  %s613_s19 = sadd.s32 4294967294, %s893_s17  }
   0xc   : > { %s34_s20 = sadd.s32 1, %s889_s16  ;;  %s43_s21 = sadd.s32 1, %s881_s14 }
   0xd   : > { %p36_p0 = scmp.ge.s32.totalorder %s34_s20, 2  ;;  %p50_p1 = scmp.ne.s32.totalorder %s881_s14, %s877_s13 }
   0xe   : > { %p51_p2 = scmp.eq.s32.totalorder %s893_s17, 0  ;;  %p56_p3 = scmp.ne.s32.totalorder %s877_s13, %s873_s12 }
   0xf   : > { %s1119_s20 = smov (%p36_p0, %s34_s20), 0  ;;  %p57_p5 = scmp.eq.s32.totalorder %s947_s18, 0 }
  0x10   : > { %1098 = sst [smem:[#allocation14_spill]] %s1119_s20  ;;  %p959_p4 = por %p51_p2, %p50_p1 }
  0x11   : > { %s38_s23 = ssub.s32 %s889_s16, %s1119_s20  ;;  %p138_p6 = scmp.eq.s32.totalorder %s947_s18, 1 }
  0x12   : > { %p41_p7 = scmp.eq.s32.totalorder %s38_s23, 0  ;;  %p967_p8 = por %p57_p5, %p56_p3 }
  0x13   : > { %p971_p9 = por %p138_p6, %p50_p1  ;;  %p144_p10 = scmp.eq.s32.totalorder %s613_s19, 1 }
  0x14   : > { %s976_s26 = scalar_select %p41_p7, %s881_s14, %s43_s21  }
  0x15   : > { %p978_p11 = por %p144_p10, %p56_p3  ;;  %p615_p12 = scmp.ge.s32.totalorder %s893_s17, 2 }
  0x16   : > { %1102 = sst [smem:[#allocation15_spill]] %s976_s26  ;;  %p658_p13 = scmp.lt.s32.totalorder %s893_s17, 2 }
  0x17   : > { %s1103_s27 = scalar_select %p978_p11, 1, 0 }
  0x18   : > { %s164_s28 = sand.u32 1, %s881_s14   ;;  %s634_s30 = sshll.u32 %s889_s16, 3 }
  0x19   : > { %1104 = sst [smem:[#allocation16_spill]] %s1103_s27  ;;  %s616_s29 = sshll.u32 %s164_s28, 3 }
  0x1a   : > { %p988_p0 = pnand %p658_p13, %p959_p4  ;;  %s186_s5 = sand.u32 1, %s893_s17  }
  0x1b   : > { %s1106_s1 = sld [smem:[#allocation17_spill]]  ;;  %s190_s10 = scalar_lea.vmem [#allocation5], %s616_s29 }
  0x1c   : > { %s201_s11 = sshll.u32 %s190_s10, 4  ;;  %s187_s19 = scalar_lea.sflag [#allocation6], %s186_s5  ;;  %s202_s11 = int_to_ptr.vmem [resolvable:$true] %s201_s11 }
  0x1d   : > { %p624_p1 = scmp.ge.s32.totalorder %s893_s17, 1  ;;  %p227_p2 = scmp.lt.s32.totalorder %s893_s17, 3 }
  0x1e   : > { %s175_s6 = scalar_lea.hbm %s1086_s0, %s634_s30  ;;  %s622_s5 = sshll.u32 %s164_s28, 1 }
  0x1f   : > { %p1000_p3 = pnand %p624_p1, %p227_p2  ;;  %s177_s7 = sshll.u32 %s175_s6, 4  ;;  %s178_s7 = int_to_ptr.hbm [resolvable:$true] %s177_s7 }
  0x20   : > { %s212_s17 = scalar_lea.vmem [#allocation7], %s622_s5 }
  0x21   : > { %s197_s8 = scalar_lea.hbm %s1106_s1, %s634_s30  ;;  %s165_s1 = scalar_lea.sflag [#allocation3], %s164_s28 }
  0x22   : > { %s199_s9 = sshll.u32 %s197_s8, 4  ;;  %s168_s8 = scalar_lea.vmem [#allocation2], %s616_s29  ;;  %s200_s9 = int_to_ptr.hbm [resolvable:$true] %s199_s9 }
  0x23   : > { %650 = dma.hbm_to_vmem [thread:$0]  (!%p988_p0), %s200_s9, 128, %s202_s11, %s187_s19  }
  0x24   : > { %s179_s10 = sshll.u32 %s168_s8, 4  ;;  %s623_s9 = sshll.u32 %s889_s16, 1  ;;  %s180_s10 = int_to_ptr.vmem [resolvable:$true] %s179_s10 }
  0x25   : > { %647 = dma.hbm_to_vmem [thread:$0]  (!%p988_p0), %s178_s7, 128, %s180_s10, %s165_s1  }
  0x26   : > { %s218_s26 = scalar_lea.hbm %s1088_s2, %s623_s9  ;;  %s222_s27 = sshll.u32 %s212_s17, 4  ;;  %s223_s27 = int_to_ptr.vmem [resolvable:$true] %s222_s27 }
  0x27   : > { %s220_s14 = sshll.u32 %s218_s26, 4  ;;  %231 = sbr.rel (%p1000_p3) target bundleno = 166 (0xa6), region = 32  ;;  %s221_s14 = int_to_ptr.hbm [resolvable:$true] %s220_s14 }
  0x28   : > { %653 = dma.hbm_to_vmem [thread:$0]  (!%p988_p0), %s221_s14, 32, %s223_s27, %s187_s19  }
  0x29   : > { %s1018_s29 = sand.u32 (!%p1000_p3), 1, %s877_s13  }
  0x2a   : > { %s625_s1 = sshll.u32 (!%p1000_p3), %s1018_s29, 3  ;;  %s234_s28 = scalar_lea.sflag (!%p1000_p3), [#allocation3], %s1018_s29 }
  0x2b   : > { %s237_s20 = scalar_lea.vmem (!%p1000_p3), [#allocation2], %s625_s1 }
  0x2c   : > { %860 = dma.done.wait (%p967_p8), %s234_s28, 128  }
  0x2d   : > { %862 = vsyncadd (%p967_p8), %s234_s28, 4294967168  ;;  %s243_s14 = sand.u32 1, %s947_s18   ;;  %s247_s26 = scalar_lea.vmem [#allocation5], %s625_s1 }
  0x2e   : > { %s244_s17 = scalar_lea.sflag [#allocation6], %s243_s14 }
  0x2f   : > { %864 = dma.done.wait (%p967_p8), %s244_s17, 160  }
  0x30   : > { %866 = vsyncadd (%p967_p8), %s244_s17, 4294967136  ;;  %v295_v0 = vld [vmem:[%s237_s20] sm:$0xff]  ;;  %vm303_vm0 = vcmask 1043456   ;;  %v296_v1 = vld [vmem:[%s247_s26] sm:$0xff]  ;;  %s627_s18 = sshll.u32 %s1018_s29, 1  ;;  %s631_s27 = sshll.u32 %s885_s15, 1 }
  0x31   : > { %298 = vst [vmem:[#allocation1] ss:$2 sm:$0xff] %v295_v0  ;;  %s257_s24 = scalar_lea.vmem [#allocation7], %s627_s18  ;;  %s476_s19 = scalar_lea.hbm %s1089_s3, %s631_s27  ;;  %vm454_vm8 = vcmask 1040384  }
  0x32   : > { %s290_s21 = scalar_lea.vmem [#allocation8], %s627_s18  ;;  %s480_s22 = sshll.u32 %s476_s19, 4  ;;  %s481_s22 = int_to_ptr.hbm [resolvable:$true] %s480_s22 }
  0x33   : > { %s478_s15 = sshll.u32 %s290_s21, 4  ;;  %s464_s23 = scalar_lea.sflag [#allocation4], %s1018_s29  ;;  %s479_s15 = int_to_ptr.vmem [resolvable:$true] %s478_s15 }
  0x34   : > { %s821_s6 = sshra.s32 %s481_s22, 4  ;;  %s827_s5 = scalar_lea.hbm %s1089_s3, 4  ;;  %s822_s6 = int_to_ptr.hbm [resolvable:$true] %s821_s6 }
  0x35   : > { %s823_s7 = scalar_lea.hbm %s822_s6, 2  ;;  %p828_p7 = scmp.lt.s32.totalorder %s822_s6, %s1089_s3 }
  0x36   : > { %p824_p4 = scmp.ne.s32.totalorder %s822_s6, %s823_s7  ;;  %p829_p8 = scmp.lt.s32.totalorder %s827_s5, %s823_s7 }
  0x38   : > { %v299_v2 = vld.sshfl [vmem:[#allocation1] sm:$0xff pattern:$0x75316420]  ;;  %v300_v3 = vld.sshfl [vmem:[#allocation1 + $0x8] sm:$0xff pattern:$0x75316420]  ;;  %p825_p5 = pnand %p824_p4, %p971_p9  ;;  %p830_p10 = por %p829_p8, %p828_p7 }
  0x39   : > { %v304_v4 = vsel %vm303_vm0, %v299_v2, -inf  ;;  %v311_v5 = vsel %vm303_vm0, %v300_v3, -inf  ;;  %327 = vst [vmem:[#allocation1] ss:$2 sm:$0xff] %v296_v1 }
  0x3a   : > { %v305_v6 = vrot.slane %v304_v4, 4  ;;  %v312_v7 = vrot.slane %v311_v5, 4  ;;  %p826_p6 = pneg %p825_p5 }
  0x3c   : > { %v306_v8 = vmax.f32 %v304_v4, %v305_v6  ;;  %v313_v9 = vmax.f32 %v311_v5, %v312_v7  ;;  %p831_p13 = pnand %p830_p10, %p826_p6 }
  0x3e   : > { %v307_v10 = vrot.slane %v306_v8, 2  ;;  %v314_v11 = vrot.slane %v313_v9, 2 }
  0x40   : > { %v308_v12 = vmax.f32 %v306_v8, %v307_v10  ;;  %v315_v13 = vmax.f32 %v313_v9, %v314_v11  ;;  %v328_v14 = vld.sshfl [vmem:[#allocation1] sm:$0xff pattern:$0x75316420]  ;;  %v329_v15 = vld.sshfl [vmem:[#allocation1 + $0x8] sm:$0xff pattern:$0x75316420] }
  0x41   : > { %v332_v16 = vsel %vm303_vm0, %v328_v14, -inf  ;;  %v339_v17 = vsel %vm303_vm0, %v329_v15, -inf }
  0x42   : > { %v316_v18 = vrot.slane %v315_v13, 1  ;;  %v333_v19 = vrot.slane %v332_v16, 4  ;;  %v340_v20 = vrot.slane %v339_v17, 4  ;;  %v309_v21 = vrot.slane %v308_v12, 1 }
  0x44   : > { %v317_v22 = vmax.f32 %v315_v13, %v316_v18  ;;  %v334_v23 = vmax.f32 %v332_v16, %v333_v19  ;;  %v341_v24 = vmax.f32 %v339_v17, %v340_v20  ;;  %v310_v28 = vmax.f32 %v308_v12, %v309_v21 }
  0x46   : > { %v320_v25 = vrot.slane %v317_v22, 4  ;;  %v335_v26 = vrot.slane %v334_v23, 2  ;;  %v342_v27 = vrot.slane %v341_v24, 2 }
  0x48   : > { %v336_v29 = vmax.f32 %v334_v23, %v335_v26  ;;  %v343_v30 = vmax.f32 %v341_v24, %v342_v27  ;;  %v321_v31 = vsel %vm303_vm0, %v310_v28, %v320_v25 }
  0x49   : > { %v323_v34 = vsub.f32 %v295_v0, %v321_v31 }
  0x4a   : > { %v337_v32 = vrot.slane %v336_v29, 1  ;;  %v344_v33 = vrot.slane %v343_v30, 1 }
  0x4b   : > { %v324_v38 = vmul.f32 1.442695, %v323_v34 }
  0x4c   : > { %v345_v35 = vmax.f32 %v343_v30, %v344_v33  ;;  %v338_v36 = vmax.f32 %v336_v29, %v337_v32 }
  0x4d   : > { %709 = vpow2.f32 %v324_v38 }
  0x4e   : > { %v348_v37 = vrot.slane %v345_v35, 4 }
  0x50   : > { %v349_v39 = vsel %vm303_vm0, %v338_v36, %v348_v37 }
  0x51   : > { %v351_v40 = vsub.f32 %v296_v1, %v349_v39 }
  0x53   : > { %v352_v41 = vmul.f32 1.442695, %v351_v40  ;;  %v710_v42 = vpop.eup %709 }
  0x54   : > { %v375_v45 = vmul.f32 %v710_v42, %v710_v42 }
  0x55   : > { %711 = vpow2.f32 %v352_v41 }
  0x5b   : > { %v712_v43 = vpop.eup %711 }
  0x5c   : > { %v354_v44 = vmul.f32 %v712_v43, %v710_v42  ;;  %v398_v48 = vmul.f32 %v712_v43, %v712_v43 }
  0x5e   : > { %356 = vst [vmem:[#allocation1] ss:$2 sm:$0xff] %v354_v44 }
  0x65   : > { %v357_v46 = vld.sshfl [vmem:[#allocation1] sm:$0xff pattern:$0x75316420]  ;;  %v358_v47 = vld.sshfl [vmem:[#allocation1 + $0x8] sm:$0xff pattern:$0x75316420] }
  0x66   : > { %377 = vst [vmem:[#allocation1] ss:$2 sm:$0xff] %v375_v45  ;;  %v361_v15 = vsel %vm303_vm0, %v357_v46, 0.0  ;;  %v368_v16 = vsel %vm303_vm0, %v358_v47, 0.0 }
  0x67   : > { %v362_v23 = vrot.slane %v361_v15, 4  ;;  %v369_v24 = vrot.slane %v368_v16, 4 }
  0x69   : > { %v363_v27 = vadd.f32 %v362_v23, %v361_v15  ;;  %v370_v28 = vadd.f32 %v369_v24, %v368_v16 }
  0x6b   : > { %v364_v29 = vrot.slane %v363_v27, 2  ;;  %v371_v30 = vrot.slane %v370_v28, 2 }
  0x6d   : > { %v378_v49 = vld.sshfl [vmem:[#allocation1] sm:$0xff pattern:$0x75316420]  ;;  %v379_v50 = vld.sshfl [vmem:[#allocation1 + $0x8] sm:$0xff pattern:$0x75316420]  ;;  %v365_v35 = vadd.f32 %v364_v29, %v363_v27  ;;  %v372_v36 = vadd.f32 %v371_v30, %v370_v28 }
  0x6e   : > { %400 = vst [vmem:[#allocation1] ss:$2 sm:$0xff] %v398_v48  ;;  %v382_v51 = vsel %vm303_vm0, %v378_v49, 0.0  ;;  %v389_v52 = vsel %vm303_vm0, %v379_v50, 0.0  ;;  %v445_v50 = vld [vmem:[%s257_s24] sm:$0x3] }
  0x6f   : > { %v383_v53 = vrot.slane %v382_v51, 4  ;;  %v390_v54 = vrot.slane %v389_v52, 4  ;;  %v366_v41 = vrot.slane %v365_v35, 1  ;;  %v373_v42 = vrot.slane %v372_v36, 1 }
  0x70   : > { %vm446_vm7 = vcmp.eq.s32.totalorder %v445_v50, 0 }
  0x71   : > { %v384_v55 = vadd.f32 %v383_v53, %v382_v51  ;;  %v391_v56 = vadd.f32 %v390_v54, %v389_v52  ;;  %v367_v47 = vadd.f32 %v366_v41, %v365_v35  ;;  %v374_v48 = vadd.f32 %v373_v42, %v372_v36 }
  0x73   : > { %v385_v57 = vrot.slane %v384_v55, 2  ;;  %v392_v58 = vrot.slane %v391_v56, 2 }
  0x75   : > { %v401_v59 = vld.sshfl [vmem:[#allocation1] sm:$0xff pattern:$0x75316420]  ;;  %v402_v60 = vld.sshfl [vmem:[#allocation1 + $0x8] sm:$0xff pattern:$0x75316420]  ;;  %v386_v61 = vadd.f32 %v385_v57, %v384_v55  ;;  %v393_v0 = vadd.f32 %v392_v58, %v391_v56  ;;  %v458_v55 = vlaneseq }
  0x76   : > { %v405_v62 = vsel %vm303_vm0, %v401_v59, 0.0  ;;  %v412_v63 = vsel %vm303_vm0, %v402_v60, 0.0  ;;  %v895_v56 = vmov 0.0  }
  0x77   : > { %v406_v1 = vrot.slane %v405_v62, 4  ;;  %v413_v2 = vrot.slane %v412_v63, 4  ;;  %v387_v5 = vrot.slane %v386_v61, 1  ;;  %v394_v6 = vrot.slane %v393_v0, 1 }
  0x78   : > { %v629_v57 = vsel %vm446_vm7, 1.0, %v895_v56  ;;  %vm460_vm9 = vcmp.lt.s32.totalorder %v458_v55, 256 }
  0x79   : > { %v407_v3 = vadd.f32 %v406_v1, %v405_v62  ;;  %v414_v4 = vadd.f32 %v413_v2, %v412_v63  ;;  %v388_v11 = vadd.f32 %v387_v5, %v386_v61  ;;  %v395_v12 = vadd.f32 %v394_v6, %v393_v0 }
  0x7b   : > { %v408_v7 = vrot.slane %v407_v3, 2  ;;  %v415_v8 = vrot.slane %v414_v4, 2  ;;  %v396_v19 = vadd.f32 1e-12, %v388_v11  ;;  %v397_v20 = vadd.f32 1e-12, %v395_v12 }
  0x7d   : > { %v409_v9 = vadd.f32 %v408_v7, %v407_v3  ;;  %v416_v10 = vadd.f32 %v415_v8, %v414_v4 }
  0x7f   : > { %v410_v13 = vrot.slane %v409_v9, 1  ;;  %v417_v14 = vrot.slane %v416_v10, 1 }
  0x81   : > { %v411_v17 = vadd.f32 %v410_v13, %v409_v9  ;;  %v418_v18 = vadd.f32 %v417_v14, %v416_v10 }
  0x83   : > { %v419_v21 = vadd.f32 1e-12, %v411_v17  ;;  %v420_v22 = vadd.f32 1e-12, %v418_v18 }
  0x85   : > { %v421_v25 = vmul.f32 %v419_v21, %v396_v19  ;;  %v422_v26 = vmul.f32 %v420_v22, %v397_v20 }
  0x87   : > { %713 = vrsqrt.f32 %v421_v25  ;;  %vm429_vm3 = vweird.f32 %v421_v25  ;;  %vm439_vm5 = vweird.f32 %v422_v26 }
  0x88   : > { %715 = vrsqrt.f32 %v422_v26 }
  0x8d   : > { %v714_v31 = vpop.eup %713 }
  0x8e   : > { %v716_v32 = vpop.eup %715  ;;  %v424_v33 = vmul.f32 %v714_v31, %v421_v25  ;;  %vm430_vm1 = vweird.f32 %v714_v31 }
  0x8f   : > { %v434_v34 = vmul.f32 %v716_v32, %v422_v26  ;;  %vm440_vm2 = vweird.f32 %v716_v32  ;;  %vm431_vm4 = vmor %vm429_vm3, %vm430_vm1 }
  0x90   : > { %v425_v37 = vmul.f32 %v714_v31, %v424_v33  ;;  %vm441_vm6 = vmor %vm439_vm5, %vm440_vm2 }
  0x91   : > { %v435_v38 = vmul.f32 %v716_v32, %v434_v34 }
  0x92   : > { %v426_v39 = vmul.f32 0.5, %v425_v37 }
  0x93   : > { %v436_v40 = vmul.f32 0.5, %v435_v38 }
  0x94   : > { %v427_v43 = vsub.f32 1.5, %v426_v39 }
  0x95   : > { %v437_v44 = vsub.f32 1.5, %v436_v40 }
  0x96   : > { %v428_v45 = vmul.f32 %v714_v31, %v427_v43 }
  0x97   : > { %v438_v46 = vmul.f32 %v716_v32, %v437_v44 }
  0x98   : > { %v432_v49 = vsel %vm431_vm4, %v714_v31, %v428_v45 }
  0x99   : > { %v442_v51 = vsel %vm441_vm6, %v716_v32, %v438_v46  ;;  %v443_v52 = vmul.f32 %v432_v49, %v367_v47 }
  0x9a   : > { %v444_v53 = vmul.f32 %v442_v51, %v374_v48 }
  0x9b   : > { %v449_v58 = vsub.f32 1.0, %v443_v52 }
  0x9c   : > { %v450_v54 = vsub.f32 1.0, %v444_v53 }
  0x9e   : > { %v453_v59 = vrot.slane %v450_v54, 7 }
  0xa0   : > { %v455_v60 = vsel %vm454_vm8, %v449_v58, %v453_v59 }
  0xa1   : > { %v457_v61 = vmul.f32 %v629_v57, %v455_v60 }
  0xa3   : > { %462 = vst.msk [vmem:[%s290_s21] sm:$0x3] %vm460_vm9, %v457_v61 }
  0xa4   : > { %834 = shalt.err (!%p831_p13)
}
  0xa5   : > { %642 = dma.vmem_to_hbm [thread:$0]  (%p971_p9), %s479_s15, 32, %s481_s22, %s464_s23  }
  0xa6 PF: > { %s1109_s1 = sld [smem:[#allocation13_spill]]  ;;  %s492_s28 = sand.u32 1, %s873_s12  }
  0xa7   : > { %p655_p0 = pnand %p615_p12, %p978_p11  ;;  %s493_s20 = scalar_lea.sflag [#allocation4], %s492_s28 }
  0xa9   : > { %p656_p1 = pneg %p655_p0 }
  0xab   : > { %868 = dma.done.wait (%p656_p1), %s493_s20, 32  }
  0xac   : > { %870 = vsyncadd (%p656_p1), %s493_s20, 4294967264  ;;  %s22_s17 = sadd.s32 1, %s1109_s1   ;;  %s1110_s14 = sld [smem:[#allocation12_spill]] }
  0xad   : > { %p19_p2 = scmp.ge.s32.totalorder %s22_s17, 4   ;;  %s1111_s26 = sld [smem:[#allocation15_spill]] }
  0xae   : > { %s1112_s25 = sld [smem:[#allocation14_spill]]  ;;  %s1113_s12 = smov %s877_s13 }
  0xaf   : > { %s1116_s15 = smov %s889_s16 }
  0xb0   :  { %21 = sbr.rel (!%p19_p2) target bundleno = 10 (0xa), region = 101 }
  0xb2   : > { %s1114_s13 = smov %s1110_s14 }
  0xb3   : > { %s1115_s14 = smov %s1111_s26 }
  0xb4   : > { %s1117_s16 = smov %s1112_s25 }
  0xb5   :  { %499 = vsyncpa [#allocation3], 1 }
  0xb6   :  { %501 = vsyncpa [#allocation3 + $0x1], 1 }
  0xb7   :  { %502 = vsyncpa [#allocation6], 1 }
  0xb8   :  { %504 = vsyncpa [#allocation6 + $0x1], 1 }
  0xb9   :  { %505 = vsyncpa [#allocation4], 1 }
  0xba   :  { %507 = vsyncpa [#allocation4 + $0x1], 1 }

</bundles_post_ra>
